<compile_context>
chip_gen: v6e
topology: v6e:2x2x1
jax: 0.10.0
libtpu: 0.0.40
codegen_flags: <defaults>
</compile_context>

<pallas_src>
import functools

import jax
import jax.numpy as jnp
from jax import lax
from jax.experimental import pallas as pl
from jax.experimental.pallas import tpu as pltpu

BN_EPS = 1e-5  # torch.nn.BatchNorm2d default


def _round_up(x, m):
    return (x + m - 1) // m * m


def _vmem_budget():
    """Generation-aware scoped-VMEM budget (~3/4 of physical VMEM)."""
    cap = 64 * 1024 * 1024
    try:
        info = pltpu.get_tpu_info()
        cap = int(getattr(info, "vmem_capacity_bytes", cap) or cap)
    except Exception:
        pass  # safe fallback: 48 MiB budget fits every generation
    return max(16 * 1024 * 1024, cap * 3 // 4)


def _pass1_tile(k, cout, taps, has_next, l_spatial, min_ts, budget):
    """Largest 128-multiple spatial tile whose pass-1 working set fits VMEM."""
    ts_min = _round_up(max(min_ts, 128), 128)
    ts = max(_round_up(l_spatial, 128), ts_min)
    w_bytes = 2 * taps * cout * k * 2                       # resident bf16 weights (dbuf)

    def need(t):
        in_b = (4 if has_next else 2) * k * t * 2           # double-buffered bf16 inputs
        mask_b = 2 * t * 4                                  # double-buffered f32 mask
        out_b = 2 * cout * t * 2 + 4 * cout * 4             # bf16 conv tile (dbuf) + stats
        tmp_b = (4 if has_next else 2) * k * t * 2 + 3 * cout * t * 4  # concat/taps + acc
        return w_bytes + in_b + mask_b + out_b + tmp_b

    while ts > ts_min and need(ts) > budget:
        ts -= 128
    return max(ts, ts_min)


def _pass2_tile(cout, ts1, l_out, budget):
    """Largest lane-dense tile (multiple of ts1, divides l_out) for the BN affine."""
    s = l_out // ts1
    best = ts1
    for m in range(1, s + 1):
        if s % m == 0 and 22 * cout * ts1 * m <= budget:
            best = max(best, ts1 * m)
    return best


def _pass1_kernel(*refs, offsets, ts, has_next):
    """Operator pass: folded-tap MXU dots + masked per-channel BN partials.

    refs (has_next=True):  x_cur, x_next, w, mask, conv_out, sum_out, sq_out,
                           sum_scratch, sq_scratch
    refs (has_next=False): x_cur,         w, mask, conv_out, sum_out, sq_out,
                           sum_scratch, sq_scratch

    x_cur/x_next: (1, K, TS)    bf16 flattened (padded-width) input blocks
    w:            (T, Cout, K)  bf16 resident per-tap weights
    mask:         (1, TS)       f32 validity mask (pad / junk positions are 0)
    conv_out:     (1, Cout, TS) bf16 operator output tile
    sum/sq out:   (1, Cout, 1)  f32 per-image channel partials (written once)
    """
    if has_next:
        x_ref, xn_ref, w_ref, m_ref, conv_ref, sum_ref, sq_ref, sum_sc, sq_sc = refs
        xw = jnp.concatenate([x_ref[0], xn_ref[0]], axis=1)        # (K, 2*TS)
    else:
        x_ref, w_ref, m_ref, conv_ref, sum_ref, sq_ref, sum_sc, sq_sc = refs
        xw = x_ref[0]                                              # (K, TS)

    acc = None
    for t, off in enumerate(offsets):                              # static unroll (<= 9)
        xt = xw[:, off:off + ts]                                   # static lane-offset slice
        d = jnp.dot(w_ref[t], xt, preferred_element_type=jnp.float32)
        acc = d if acc is None else acc + d
    conv_ref[0] = acc.astype(conv_ref.dtype)                       # bf16 intermediate

    s_idx = pl.program_id(1)

    @pl.when(s_idx == 0)
    def _init():
        sum_sc[...] = jnp.zeros_like(sum_sc)
        sq_sc[...] = jnp.zeros_like(sq_sc)

    av = acc * m_ref[...]                                          # zero out pad/junk lanes
    sum_sc[...] += jnp.sum(av, axis=1, keepdims=True)
    sq_sc[...] += jnp.sum(av * acc, axis=1, keepdims=True)

    @pl.when(s_idx == pl.num_programs(1) - 1)
    def _flush():
        sum_ref[0] = sum_sc[...]
        sq_ref[0] = sq_sc[...]


def _bn_apply_kernel(conv_ref, scale_ref, shift_ref, out_ref):
    """y = conv * scale + shift with resident per-channel scalars."""
    out_ref[0] = (conv_ref[0].astype(jnp.float32) * scale_ref[...]
                  + shift_ref[...]).astype(out_ref.dtype)


def op_rgcell_forward(x_nchw, op_weight, bn_gamma, bn_beta, *, name):
    """Matches op_rgcell.forward (NCHW in / NCHW out, training-mode BN)."""
    N, Cin, H, W = x_nchw.shape
    Cout = op_weight.shape[0]
    budget = _vmem_budget()

    xb = x_nchw.astype(jnp.bfloat16)
    if name == "conv":
        # conv3x3, stride 1, padding 1, bias-free.  Zero-pad once to (H+2, Wp)
        # with Wp = W+2 and flatten space; tap (ky, kx) then reads the
        # flattened input at a constant offset ky*Wp + kx -> no im2col in HBM.
        Wp = W + 2
        K = Cin
        wt = jnp.transpose(op_weight, (2, 3, 0, 1)).reshape(9, Cout, Cin)
        offsets = tuple(ky * Wp + kx for ky in range(3) for kx in range(3))
        has_next = True
        l_valid = H * Wp
        ts = _pass1_tile(K, Cout, 9, True, l_valid, 2 * Wp + 2, budget)
        l_out = _round_up(l_valid, ts)
        s_tiles = l_out // ts
        l_in = (s_tiles + 1) * ts          # one extra block = halo of the last tile
        xflat = jnp.pad(xb, ((0, 0), (0, 0), (1, 1), (1, Wp - W - 1)))
        xflat = xflat.reshape(N, Cin, (H + 2) * Wp)
        xflat = jnp.pad(xflat, ((0, 0), (0, 0), (0, l_in - (H + 2) * Wp)))
    else:
        # nn.Linear(in, out, bias=False) applied along the channel axis.
        Wp = W
        K = Cin
        wt = op_weight[None]               # (1, Cout, Cin), single tap at offset 0
        offsets = (0,)
        has_next = False
        l_valid = H * W
        ts = _pass1_tile(K, Cout, 1, False, l_valid, 128, budget)
        l_out = _round_up(l_valid, ts)
        s_tiles = l_out // ts
        xflat = jnp.pad(xb.reshape(N, Cin, H * W),
                        ((0, 0), (0, 0), (0, l_out - H * W)))

    wt = wt.astype(jnp.bfloat16)
    T = wt.shape[0]

    # Validity mask over the flattened (padded) output grid: excludes the lane
    # padding tail and, for conv, the Wp-W junk columns of each row.
    pos = jnp.arange(l_out, dtype=jnp.int32)
    mask = ((pos < l_valid) & (pos % Wp < W)).astype(jnp.float32).reshape(1, l_out)

    kern = functools.partial(_pass1_kernel, offsets=offsets, ts=ts,
                             has_next=has_next)
    in_specs = [pl.BlockSpec((1, K, ts), lambda n, s: (n, 0, s))]
    args = [xflat]
    if has_next:
        in_specs.append(pl.BlockSpec((1, K, ts), lambda n, s: (n, 0, s + 1)))
        args.append(xflat)                 # same buffer, read-only halo view
    in_specs += [pl.BlockSpec((T, Cout, K), lambda n, s: (0, 0, 0)),   # resident weights
                 pl.BlockSpec((1, ts), lambda n, s: (0, s))]
    args += [wt, mask]

    conv_bf16, psum, psq = pl.pallas_call(
        kern,
        out_shape=(jax.ShapeDtypeStruct((N, Cout, l_out), jnp.bfloat16),
                   jax.ShapeDtypeStruct((N, Cout, 1), jnp.float32),
                   jax.ShapeDtypeStruct((N, Cout, 1), jnp.float32)),
        grid=(N, s_tiles),
        in_specs=in_specs,
        out_specs=(pl.BlockSpec((1, Cout, ts), lambda n, s: (n, 0, s)),
                   pl.BlockSpec((1, Cout, 1), lambda n, s: (n, 0, 0)),
                   pl.BlockSpec((1, Cout, 1), lambda n, s: (n, 0, 0))),
        scratch_shapes=[pltpu.VMEM((Cout, 1), jnp.float32),
                        pltpu.VMEM((Cout, 1), jnp.float32)],
        compiler_params=pltpu.CompilerParams(
            dimension_semantics=("parallel", "arbitrary"),
            vmem_limit_bytes=budget),
    )(*args)

    # Finalize BN statistics over the N*H*W population (tiny (Cout,) math).
    # TODO(synk): E[x^2]-E[x]^2 in f32 can cancel for |mean| >> std; a shifted
    #             two-pass variance would be safer for extreme statistics.
    m_count = float(N * H * W)
    tot = jnp.sum(psum, axis=0)[:, 0]       # (Cout,)
    tot_sq = jnp.sum(psq, axis=0)[:, 0]     # (Cout,)
    mean = tot / m_count
    var = jnp.maximum(tot_sq / m_count - mean * mean, 0.0)   # biased, like torch BN
    inv = lax.rsqrt(var + BN_EPS)
    scale = (bn_gamma * inv).astype(jnp.float32).reshape(Cout, 1)
    shift = (bn_beta - mean * bn_gamma * inv).astype(jnp.float32).reshape(Cout, 1)

    ts2 = _pass2_tile(Cout, ts, l_out, budget)   # pass-2 tile decoupled from pass 1
    s2_tiles = l_out // ts2
    y = pl.pallas_call(
        _bn_apply_kernel,
        out_shape=jax.ShapeDtypeStruct((N, Cout, l_out), jnp.float32),
        grid=(N, s2_tiles),
        in_specs=[pl.BlockSpec((1, Cout, ts2), lambda n, s: (n, 0, s)),
                  pl.BlockSpec((Cout, 1), lambda n, s: (0, 0)),   # resident scale
                  pl.BlockSpec((Cout, 1), lambda n, s: (0, 0))],  # resident shift
        out_specs=pl.BlockSpec((1, Cout, ts2), lambda n, s: (n, 0, s)),
        compiler_params=pltpu.CompilerParams(
            dimension_semantics=("parallel", "parallel"),
            vmem_limit_bytes=budget),
    )(conv_bf16, scale, shift)

    # Strip lane padding (and, for conv, the junk columns of the padded width).
    if name == "conv":
        y = y[:, :, :H * Wp].reshape(N, Cout, H, Wp)[:, :, :, :W]
    else:
        y = y[:, :, :H * W].reshape(N, Cout, H, W)
    return y


def init_op_rgcell_params(in_channels, out_channels, name, gamma_init):
    """Deterministic init mirroring op_rgcell.__init__."""
    if name == "conv":
        op_w = jnp.zeros((out_channels, in_channels, 3, 3), jnp.float32)  # zeros_
    else:
        op_w = jnp.zeros((out_channels, in_channels), jnp.float32)        # zeros_
    bn_gamma = jnp.ones((out_channels,), jnp.float32) * gamma_init
    bn_beta = jnp.zeros((out_channels,), jnp.float32)
    return op_w, bn_gamma, bn_beta


def _reference(x_nchw, op_weight, gamma, beta, *, name):
    """Pure-JAX f32 reference of the PyTorch forward (training-mode BN)."""
    if name == "conv":
        out = lax.conv_general_dilated(
            x_nchw, op_weight, window_strides=(1, 1), padding=((1, 1), (1, 1)),
            dimension_numbers=("NCHW", "OIHW", "NCHW"),
        )
    else:
        out = jnp.einsum("nchw,oc->nohw", x_nchw, op_weight)
    mean = out.mean(axis=(0, 2, 3), keepdims=True)
    var = out.var(axis=(0, 2, 3), keepdims=True)  # biased, like torch BN
    return (out - mean) / jnp.sqrt(var + BN_EPS) * gamma.reshape(1, -1, 1, 1) \
        + beta.reshape(1, -1, 1, 1)


if __name__ == "__main__":
    key = jax.random.PRNGKey(0)
    kx, kw = jax.random.split(key)
    N, Cin, H, W = 2, 4, 16, 16
    Cout = 8
    gamma_init = 0.5
    x = jax.random.normal(kx, (N, Cin, H, W), jnp.float32)

    # Sanity-check kernel math with non-zero weights against an f32 JAX
    # reference.  The kernel feeds bf16 operands to the MXU and keeps a bf16
    # intermediate (f32 accumulation / f32 BN stats), so tolerance is set for
    # bf16 rounding.
    for name in ("conv", "linear"):
        _, g, b = init_op_rgcell_params(Cin, Cout, name, gamma_init)
        wshape = (Cout, Cin, 3, 3) if name == "conv" else (Cout, Cin)
        w_rand = 0.1 * jax.random.normal(kw, wshape, jnp.float32)
        got = op_rgcell_forward(x, w_rand, g, b, name=name)
        want = _reference(x, w_rand, g, b, name=name)
        assert got.shape == want.shape == (N, Cout, H, W)
        assert jnp.allclose(got, want, atol=3e-2, rtol=3e-2), name

    # Module-faithful forward: operator weight is zero-initialized (nn.init.zeros_).
    w0, g, b = init_op_rgcell_params(Cin, Cout, "conv", gamma_init)
    out = op_rgcell_forward(x, w0, g, b, name="conv")
    jax.block_until_ready(out)
    assert out.shape == (N, Cout, H, W)
    assert bool(jnp.all(jnp.isfinite(out)))
    print("KERNEL_OK")
</pallas_src>

<mosaic_0001>
module attributes {stable_mosaic.version = 11 : i64} {
  func.func @_pass1_kernel(%arg0: i32, %arg1: i32, %arg2: memref<1x4x384xbf16, #tpu.memory_space<vmem>>, %arg3: memref<1x4x384xbf16, #tpu.memory_space<vmem>>, %arg4: memref<9x8x4xbf16, #tpu.memory_space<vmem>>, %arg5: memref<1x384xf32, #tpu.memory_space<vmem>>, %arg6: memref<1x8x384xbf16, #tpu.memory_space<vmem>>, %arg7: memref<1x8x1xf32, #tpu.memory_space<vmem>>, %arg8: memref<1x8x1xf32, #tpu.memory_space<vmem>>, %arg9: memref<8x1xf32, #tpu.memory_space<vmem>>, %arg10: memref<8x1xf32, #tpu.memory_space<vmem>>) attributes {dimension_semantics = [#tpu.dimension_semantics<parallel>, #tpu.dimension_semantics<arbitrary>], iteration_bounds = array<i64: 2, 1>, scalar_prefetch = 0 : i64, scratch_operands = 2 : i64, tpu.core_type = #tpu.core_type<tc>, window_params = [{transform_indices = @transform_0, window_bounds = array<i64: 1, 4, 384>}, {transform_indices = @transform_1, window_bounds = array<i64: 1, 4, 384>}, {pipeline_mode = #tpu.pipeline_mode<synchronous>, transform_indices = @transform_2, window_bounds = array<i64: 9, 8, 4>}, {transform_indices = @transform_3, window_bounds = array<i64: 1, 384>}, {transform_indices = @transform_4, window_bounds = array<i64: 1, 8, 384>}, {transform_indices = @transform_5, window_bounds = array<i64: 1, 8, 1>}, {transform_indices = @transform_6, window_bounds = array<i64: 1, 8, 1>}]} {
    %c0 = arith.constant 0 : index
    %c0_0 = arith.constant 0 : index
    %c0_1 = arith.constant 0 : index
    %0 = vector.load %arg2[%c0, %c0_0, %c0_1] : memref<1x4x384xbf16, #tpu.memory_space<vmem>>, vector<1x4x384xbf16>
    %1 = vector.shape_cast %0 : vector<1x4x384xbf16> to vector<4x384xbf16>
    %c0_2 = arith.constant 0 : index
    %c0_3 = arith.constant 0 : index
    %c0_4 = arith.constant 0 : index
    %2 = vector.load %arg3[%c0_2, %c0_3, %c0_4] : memref<1x4x384xbf16, #tpu.memory_space<vmem>>, vector<1x4x384xbf16>
    %3 = vector.shape_cast %2 : vector<1x4x384xbf16> to vector<4x384xbf16>
    %4 = tpu.concatenate %1, %3 in 1 : vector<4x384xbf16>, vector<4x384xbf16> -> vector<4x768xbf16>
    %5 = vector.extract_strided_slice %4 {offsets = [0, 0], sizes = [4, 384], strides = [1, 1]} : vector<4x768xbf16> to vector<4x384xbf16>
    %c0_5 = arith.constant 0 : index
    %c0_6 = arith.constant 0 : index
    %c0_7 = arith.constant 0 : index
    %6 = vector.load %arg4[%c0_5, %c0_6, %c0_7] : memref<9x8x4xbf16, #tpu.memory_space<vmem>>, vector<1x8x4xbf16>
    %7 = vector.shape_cast %6 : vector<1x8x4xbf16> to vector<8x4xbf16>
    %cst = arith.constant dense<0.000000e+00> : vector<8x384xf32>
    %8 = tpu.matmul %7, %5, %cst {dimension_numbers = #tpu.dot_dimension_numbers<[1], [0], [0], [1], [0, 0, 1, 1], [], []>} : vector<8x4xbf16>, vector<4x384xbf16>, vector<8x384xf32> -> vector<8x384xf32>
    %9 = vector.extract_strided_slice %4 {offsets = [0, 1], sizes = [4, 384], strides = [1, 1]} : vector<4x768xbf16> to vector<4x384xbf16>
    %c1 = arith.constant 1 : index
    %c0_8 = arith.constant 0 : index
    %c0_9 = arith.constant 0 : index
    %10 = vector.load %arg4[%c1, %c0_8, %c0_9] : memref<9x8x4xbf16, #tpu.memory_space<vmem>>, vector<1x8x4xbf16>
    %11 = vector.shape_cast %10 : vector<1x8x4xbf16> to vector<8x4xbf16>
    %cst_10 = arith.constant dense<0.000000e+00> : vector<8x384xf32>
    %12 = tpu.matmul %11, %9, %cst_10 {dimension_numbers = #tpu.dot_dimension_numbers<[1], [0], [0], [1], [0, 0, 1, 1], [], []>} : vector<8x4xbf16>, vector<4x384xbf16>, vector<8x384xf32> -> vector<8x384xf32>
    %13 = arith.addf %8, %12 : vector<8x384xf32>
    %14 = vector.extract_strided_slice %4 {offsets = [0, 2], sizes = [4, 384], strides = [1, 1]} : vector<4x768xbf16> to vector<4x384xbf16>
    %c2 = arith.constant 2 : index
    %c0_11 = arith.constant 0 : index
    %c0_12 = arith.constant 0 : index
    %15 = vector.load %arg4[%c2, %c0_11, %c0_12] : memref<9x8x4xbf16, #tpu.memory_space<vmem>>, vector<1x8x4xbf16>
    %16 = vector.shape_cast %15 : vector<1x8x4xbf16> to vector<8x4xbf16>
    %cst_13 = arith.constant dense<0.000000e+00> : vector<8x384xf32>
    %17 = tpu.matmul %16, %14, %cst_13 {dimension_numbers = #tpu.dot_dimension_numbers<[1], [0], [0], [1], [0, 0, 1, 1], [], []>} : vector<8x4xbf16>, vector<4x384xbf16>, vector<8x384xf32> -> vector<8x384xf32>
    %18 = arith.addf %13, %17 : vector<8x384xf32>
    %19 = vector.extract_strided_slice %4 {offsets = [0, 18], sizes = [4, 384], strides = [1, 1]} : vector<4x768xbf16> to vector<4x384xbf16>
    %c3 = arith.constant 3 : index
    %c0_14 = arith.constant 0 : index
    %c0_15 = arith.constant 0 : index
    %20 = vector.load %arg4[%c3, %c0_14, %c0_15] : memref<9x8x4xbf16, #tpu.memory_space<vmem>>, vector<1x8x4xbf16>
    %21 = vector.shape_cast %20 : vector<1x8x4xbf16> to vector<8x4xbf16>
    %cst_16 = arith.constant dense<0.000000e+00> : vector<8x384xf32>
    %22 = tpu.matmul %21, %19, %cst_16 {dimension_numbers = #tpu.dot_dimension_numbers<[1], [0], [0], [1], [0, 0, 1, 1], [], []>} : vector<8x4xbf16>, vector<4x384xbf16>, vector<8x384xf32> -> vector<8x384xf32>
    %23 = arith.addf %18, %22 : vector<8x384xf32>
    %24 = vector.extract_strided_slice %4 {offsets = [0, 19], sizes = [4, 384], strides = [1, 1]} : vector<4x768xbf16> to vector<4x384xbf16>
    %c4 = arith.constant 4 : index
    %c0_17 = arith.constant 0 : index
    %c0_18 = arith.constant 0 : index
    %25 = vector.load %arg4[%c4, %c0_17, %c0_18] : memref<9x8x4xbf16, #tpu.memory_space<vmem>>, vector<1x8x4xbf16>
    %26 = vector.shape_cast %25 : vector<1x8x4xbf16> to vector<8x4xbf16>
    %cst_19 = arith.constant dense<0.000000e+00> : vector<8x384xf32>
    %27 = tpu.matmul %26, %24, %cst_19 {dimension_numbers = #tpu.dot_dimension_numbers<[1], [0], [0], [1], [0, 0, 1, 1], [], []>} : vector<8x4xbf16>, vector<4x384xbf16>, vector<8x384xf32> -> vector<8x384xf32>
    %28 = arith.addf %23, %27 : vector<8x384xf32>
    %29 = vector.extract_strided_slice %4 {offsets = [0, 20], sizes = [4, 384], strides = [1, 1]} : vector<4x768xbf16> to vector<4x384xbf16>
    %c5 = arith.constant 5 : index
    %c0_20 = arith.constant 0 : index
    %c0_21 = arith.constant 0 : index
    %30 = vector.load %arg4[%c5, %c0_20, %c0_21] : memref<9x8x4xbf16, #tpu.memory_space<vmem>>, vector<1x8x4xbf16>
    %31 = vector.shape_cast %30 : vector<1x8x4xbf16> to vector<8x4xbf16>
    %cst_22 = arith.constant dense<0.000000e+00> : vector<8x384xf32>
    %32 = tpu.matmul %31, %29, %cst_22 {dimension_numbers = #tpu.dot_dimension_numbers<[1], [0], [0], [1], [0, 0, 1, 1], [], []>} : vector<8x4xbf16>, vector<4x384xbf16>, vector<8x384xf32> -> vector<8x384xf32>
    %33 = arith.addf %28, %32 : vector<8x384xf32>
    %34 = vector.extract_strided_slice %4 {offsets = [0, 36], sizes = [4, 384], strides = [1, 1]} : vector<4x768xbf16> to vector<4x384xbf16>
    %c6 = arith.constant 6 : index
    %c0_23 = arith.constant 0 : index
    %c0_24 = arith.constant 0 : index
    %35 = vector.load %arg4[%c6, %c0_23, %c0_24] : memref<9x8x4xbf16, #tpu.memory_space<vmem>>, vector<1x8x4xbf16>
    %36 = vector.shape_cast %35 : vector<1x8x4xbf16> to vector<8x4xbf16>
    %cst_25 = arith.constant dense<0.000000e+00> : vector<8x384xf32>
    %37 = tpu.matmul %36, %34, %cst_25 {dimension_numbers = #tpu.dot_dimension_numbers<[1], [0], [0], [1], [0, 0, 1, 1], [], []>} : vector<8x4xbf16>, vector<4x384xbf16>, vector<8x384xf32> -> vector<8x384xf32>
    %38 = arith.addf %33, %37 : vector<8x384xf32>
    %39 = vector.extract_strided_slice %4 {offsets = [0, 37], sizes = [4, 384], strides = [1, 1]} : vector<4x768xbf16> to vector<4x384xbf16>
    %c7 = arith.constant 7 : index
    %c0_26 = arith.constant 0 : index
    %c0_27 = arith.constant 0 : index
    %40 = vector.load %arg4[%c7, %c0_26, %c0_27] : memref<9x8x4xbf16, #tpu.memory_space<vmem>>, vector<1x8x4xbf16>
    %41 = vector.shape_cast %40 : vector<1x8x4xbf16> to vector<8x4xbf16>
    %cst_28 = arith.constant dense<0.000000e+00> : vector<8x384xf32>
    %42 = tpu.matmul %41, %39, %cst_28 {dimension_numbers = #tpu.dot_dimension_numbers<[1], [0], [0], [1], [0, 0, 1, 1], [], []>} : vector<8x4xbf16>, vector<4x384xbf16>, vector<8x384xf32> -> vector<8x384xf32>
    %43 = arith.addf %38, %42 : vector<8x384xf32>
    %44 = vector.extract_strided_slice %4 {offsets = [0, 38], sizes = [4, 384], strides = [1, 1]} : vector<4x768xbf16> to vector<4x384xbf16>
    %c8 = arith.constant 8 : index
    %c0_29 = arith.constant 0 : index
    %c0_30 = arith.constant 0 : index
    %45 = vector.load %arg4[%c8, %c0_29, %c0_30] : memref<9x8x4xbf16, #tpu.memory_space<vmem>>, vector<1x8x4xbf16>
    %46 = vector.shape_cast %45 : vector<1x8x4xbf16> to vector<8x4xbf16>
    %cst_31 = arith.constant dense<0.000000e+00> : vector<8x384xf32>
    %47 = tpu.matmul %46, %44, %cst_31 {dimension_numbers = #tpu.dot_dimension_numbers<[1], [0], [0], [1], [0, 0, 1, 1], [], []>} : vector<8x4xbf16>, vector<4x384xbf16>, vector<8x384xf32> -> vector<8x384xf32>
    %48 = arith.addf %43, %47 : vector<8x384xf32>
    %49 = arith.truncf %48 : vector<8x384xf32> to vector<8x384xbf16>
    %c0_32 = arith.constant 0 : index
    %c0_33 = arith.constant 0 : index
    %c0_34 = arith.constant 0 : index
    %50 = vector.load %arg6[%c0_32, %c0_33, %c0_34] : memref<1x8x384xbf16, #tpu.memory_space<vmem>>, vector<1x8x384xbf16>
    %51 = vector.shape_cast %50 : vector<1x8x384xbf16> to vector<8x384xbf16>
    %52 = vector.shape_cast %49 : vector<8x384xbf16> to vector<1x8x384xbf16>
    tpu.vector_store %arg6[%c0_32, %c0_33, %c0_34], %52 {strides = array<i32>} : memref<1x8x384xbf16, #tpu.memory_space<vmem>>, vector<1x8x384xbf16>,
    %c0_i32 = arith.constant 0 : i32
    %53 = arith.cmpi eq, %arg1, %c0_i32 : i32
    %54 = arith.extui %53 : i1 to i32
    %c0_i32_35 = arith.constant 0 : i32
    %55 = arith.cmpi ne, %54, %c0_i32_35 : i32
    scf.if %55 {
      %cst_50 = arith.constant 0.000000e+00 : f32
      %73 = vector.broadcast %cst_50 : f32 to vector<8x1xf32>
      %c0_51 = arith.constant 0 : index
      %c0_52 = arith.constant 0 : index
      %74 = vector.load %arg9[%c0_51, %c0_52] : memref<8x1xf32, #tpu.memory_space<vmem>>, vector<8x1xf32>
      tpu.vector_store %arg9[%c0_51, %c0_52], %73 {strides = array<i32>} : memref<8x1xf32, #tpu.memory_space<vmem>>, vector<8x1xf32>,
      %cst_53 = arith.constant 0.000000e+00 : f32
      %75 = vector.broadcast %cst_53 : f32 to vector<8x1xf32>
      %c0_54 = arith.constant 0 : index
      %c0_55 = arith.constant 0 : index
      %76 = vector.load %arg10[%c0_54, %c0_55] : memref<8x1xf32, #tpu.memory_space<vmem>>, vector<8x1xf32>
      tpu.vector_store %arg10[%c0_54, %c0_55], %75 {strides = array<i32>} : memref<8x1xf32, #tpu.memory_space<vmem>>, vector<8x1xf32>,
    } else {
    }
    %c0_36 = arith.constant 0 : index
    %c0_37 = arith.constant 0 : index
    %56 = vector.load %arg5[%c0_36, %c0_37] : memref<1x384xf32, #tpu.memory_space<vmem>>, vector<1x384xf32>
    %57 = vector.broadcast %56 : vector<1x384xf32> to vector<8x384xf32>
    %58 = arith.mulf %48, %57 : vector<8x384xf32>
    %c0_38 = arith.constant 0 : index
    %c0_39 = arith.constant 0 : index
    %59 = vector.load %arg9[%c0_38, %c0_39] : memref<8x1xf32, #tpu.memory_space<vmem>>, vector<8x1xf32>
    %cst_40 = arith.constant dense<0.000000e+00> : vector<8xf32>
    %60 = vector.multi_reduction <add>, %58, %cst_40 [1] : vector<8x384xf32> to vector<8xf32>
    %61 = vector.shape_cast %60 : vector<8xf32> to vector<8x1xf32>
    %62 = arith.addf %59, %61 : vector<8x1xf32>
    %c0_41 = arith.constant 0 : index
    %c0_42 = arith.constant 0 : index
    %63 = vector.load %arg9[%c0_41, %c0_42] : memref<8x1xf32, #tpu.memory_space<vmem>>, vector<8x1xf32>
    tpu.vector_store %arg9[%c0_41, %c0_42], %62 {strides = array<i32>} : memref<8x1xf32, #tpu.memory_space<vmem>>, vector<8x1xf32>,
    %c0_43 = arith.constant 0 : index
    %c0_44 = arith.constant 0 : index
    %64 = vector.load %arg10[%c0_43, %c0_44] : memref<8x1xf32, #tpu.memory_space<vmem>>, vector<8x1xf32>
    %65 = arith.mulf %58, %48 : vector<8x384xf32>
    %cst_45 = arith.constant dense<0.000000e+00> : vector<8xf32>
    %66 = vector.multi_reduction <add>, %65, %cst_45 [1] : vector<8x384xf32> to vector<8xf32>
    %67 = vector.shape_cast %66 : vector<8xf32> to vector<8x1xf32>
    %68 = arith.addf %64, %67 : vector<8x1xf32>
    %c0_46 = arith.constant 0 : index
    %c0_47 = arith.constant 0 : index
    %69 = vector.load %arg10[%c0_46, %c0_47] : memref<8x1xf32, #tpu.memory_space<vmem>>, vector<8x1xf32>
    tpu.vector_store %arg10[%c0_46, %c0_47], %68 {strides = array<i32>} : memref<8x1xf32, #tpu.memory_space<vmem>>, vector<8x1xf32>,
    %c0_i32_48 = arith.constant 0 : i32
    %70 = arith.cmpi eq, %arg1, %c0_i32_48 : i32
    %71 = arith.extui %70 : i1 to i32
    %c0_i32_49 = arith.constant 0 : i32
    %72 = arith.cmpi ne, %71, %c0_i32_49 : i32
    scf.if %72 {
      %c0_50 = arith.constant 0 : index
      %c0_51 = arith.constant 0 : index
      %73 = vector.load %arg9[%c0_50, %c0_51] : memref<8x1xf32, #tpu.memory_space<vmem>>, vector<8x1xf32>
      %c0_52 = arith.constant 0 : index
      %c0_53 = arith.constant 0 : index
      %c0_54 = arith.constant 0 : index
      %74 = vector.load %arg7[%c0_52, %c0_53, %c0_54] : memref<1x8x1xf32, #tpu.memory_space<vmem>>, vector<1x8x1xf32>
      %75 = vector.shape_cast %74 : vector<1x8x1xf32> to vector<8x1xf32>
      %76 = vector.shape_cast %73 : vector<8x1xf32> to vector<1x8x1xf32>
      tpu.vector_store %arg7[%c0_52, %c0_53, %c0_54], %76 {strides = array<i32>} : memref<1x8x1xf32, #tpu.memory_space<vmem>>, vector<1x8x1xf32>,
      %c0_55 = arith.constant 0 : index
      %c0_56 = arith.constant 0 : index
      %77 = vector.load %arg10[%c0_55, %c0_56] : memref<8x1xf32, #tpu.memory_space<vmem>>, vector<8x1xf32>
      %c0_57 = arith.constant 0 : index
      %c0_58 = arith.constant 0 : index
      %c0_59 = arith.constant 0 : index
      %78 = vector.load %arg8[%c0_57, %c0_58, %c0_59] : memref<1x8x1xf32, #tpu.memory_space<vmem>>, vector<1x8x1xf32>
      %79 = vector.shape_cast %78 : vector<1x8x1xf32> to vector<8x1xf32>
      %80 = vector.shape_cast %77 : vector<8x1xf32> to vector<1x8x1xf32>
      tpu.vector_store %arg8[%c0_57, %c0_58, %c0_59], %80 {strides = array<i32>} : memref<1x8x1xf32, #tpu.memory_space<vmem>>, vector<1x8x1xf32>,
    } else {
    }
    return
  }
  func.func @transform_0(%arg0: i32, %arg1: i32) -> (i32, i32, i32) {
    %c0_i32 = arith.constant 0 : i32
    %c0_i32_0 = arith.constant 0 : i32
    return %arg0, %c0_i32, %arg1 : i32, i32, i32
  }
  func.func @transform_1(%arg0: i32, %arg1: i32) -> (i32, i32, i32) {
    %c1_i32 = arith.constant 1 : i32
    %0 = arith.addi %arg1, %c1_i32 : i32
    %c0_i32 = arith.constant 0 : i32
    %c0_i32_0 = arith.constant 0 : i32
    return %arg0, %c0_i32, %0 : i32, i32, i32
  }
  func.func @transform_2(%arg0: i32, %arg1: i32) -> (i32, i32, i32) {
    %c0_i32 = arith.constant 0 : i32
    %c0_i32_0 = arith.constant 0 : i32
    %c0_i32_1 = arith.constant 0 : i32
    %c0_i32_2 = arith.constant 0 : i32
    return %c0_i32, %c0_i32_0, %c0_i32_1 : i32, i32, i32
  }
  func.func @transform_3(%arg0: i32, %arg1: i32) -> (i32, i32) {
    %c0_i32 = arith.constant 0 : i32
    %c0_i32_0 = arith.constant 0 : i32
    return %c0_i32, %arg1 : i32, i32
  }
  func.func @transform_4(%arg0: i32, %arg1: i32) -> (i32, i32, i32) {
    %c0_i32 = arith.constant 0 : i32
    %c0_i32_0 = arith.constant 0 : i32
    return %arg0, %c0_i32, %arg1 : i32, i32, i32
  }
  func.func @transform_5(%arg0: i32, %arg1: i32) -> (i32, i32, i32) {
    %c0_i32 = arith.constant 0 : i32
    %c0_i32_0 = arith.constant 0 : i32
    %c0_i32_1 = arith.constant 0 : i32
    return %arg0, %c0_i32, %c0_i32_0 : i32, i32, i32
  }
  func.func @transform_6(%arg0: i32, %arg1: i32) -> (i32, i32, i32) {
    %c0_i32 = arith.constant 0 : i32
    %c0_i32_0 = arith.constant 0 : i32
    %c0_i32_1 = arith.constant 0 : i32
    return %arg0, %c0_i32, %c0_i32_0 : i32, i32, i32
  }
}

</mosaic_0001>

<bundles_post_ra>
// kernel: tpu_custom_call.1
= control target key start
LH: loop header
LB: loop body
LE: loop exit
PB: predicated region body
PF: predicated region fallthrough
CT: control target
= control target key end

     0   :  { %12 = vsyncpa [#allocation5], 0  ;;  %s2208_s0 = inlined_call_operand.vmem [shape: bf16[2,4,768], index: 0, kind: input, shape index: {}]   ;;  %s2209_s1 = inlined_call_operand.vmem [shape: bf16[2,4,768], index: 1, kind: input, shape index: {}]   ;;  %s2210_s2 = inlined_call_operand.vmem [shape: bf16[9,8,4], index: 2, kind: input, shape index: {}]   ;;  %s2211_s3 = inlined_call_operand.vmem [shape: f32[1,384], index: 3, kind: input, shape index: {}]   ;;  %s2212_s4 = inlined_call_operand.hbm [shape: bf16[2,8,384], index: 4, kind: output, shape index: {0}]   ;;  %s2213_s5 = inlined_call_operand.vmem [shape: f32[2,8,1], index: 5, kind: output, shape index: {1}]   ;;  %s2214_s6 = inlined_call_operand.vmem [shape: f32[2,8,1], index: 6, kind: output, shape index: {2}]  }
   0x1   :  { %14 = vsyncpa [#allocation5 + $0x1], 0  ;;  %s1943_s21 = smov 0   ;;  %s1945_s22 = smov 0  }
   0x2   :  { %s1947_s23 = smov 0   ;;  %s1949_s24 = smov 0  }
   0x3   :  { %s1951_s25 = smov 0   ;;  %s1953_s26 = smov 0  }
   0x4 LB: > { %s1617_s27 = sadd.s32 4294967295, %s1893_s26   ;;  %s1618_s28 = sadd.s32 4294967294, %s1893_s26   ;;  %s1893_s26 = sphi %s1953_s26, %s20_s26   ;;  %s1889_s25 = sphi %s1951_s25, %s2221_s25   ;;  %s1885_s24 = sphi %s1949_s24, %s2220_s24   ;;  %s1881_s23 = sphi %s1947_s23, %s2219_s23   ;;  %s1877_s22 = sphi %s1945_s22, %s2218_s22   ;;  %s1873_s21 = sphi %s1943_s21, %s2217_s21  }
   0x5   : > { %s32_s29 = sadd.s32 1, %s1889_s25  ;;  %s146_s30 = sadd.s32 1, %s1881_s23 }
   0x6   : > { %p34_p0 = scmp.ge.s32.totalorder %s32_s29, 2  ;;  %p156_p1 = scmp.ne.s32.totalorder %s1881_s23, %s1877_s22 }
   0x7   : > { %p157_p2 = scmp.eq.s32.totalorder %s1617_s27, 1  ;;  %p162_p3 = scmp.ne.s32.totalorder %s1877_s22, %s1873_s21 }
   0x8   : > { %s2223_s29 = smov (%p34_p0, %s32_s29), 0  ;;  %p163_p5 = scmp.eq.s32.totalorder %s1618_s28, 1 }
   0x9   : > { %p1983_p4 = por %p157_p2, %p156_p1  ;;  %s141_s8 = ssub.s32 %s1889_s25, %s2223_s29 }
   0xa   : > { %p1622_p6 = scmp.ge.s32.totalorder %s1893_s26, 1  ;;  %p144_p7 = scmp.eq.s32.totalorder %s141_s8, 0 }
   0xb   : > { %p1990_p8 = por %p163_p5, %p162_p3  ;;  %p272_p9 = scmp.lt.s32.totalorder %s1893_s26, 3 }
   0xc   : > { %s1996_s10 = scalar_select %p144_p7, %s1881_s23, %s146_s30  }
   0xd   : > { %p273_p10 = pnand %p1622_p6, %p272_p9 }
   0xe   : > { %p329_p11 = scmp.lt.s32.totalorder (!%p273_p10), %s1885_s24, 1  ;;  %s1899_s17 = smov (!%p273_p10), 127  }
   0xf   : > { %276 = sbr.rel (%p273_p10) target bundleno = 571 (0x23b), region = 36  ;;  %s1900_s27 = smov (!%p273_p10), 126  }
  0x10   : > { %s1901_s28 = smov (!%p273_p10), 110   ;;  %s1902_s30 = smov (!%p273_p10), 109  }
  0x11   : > { %s1903_s8 = smov (!%p273_p10), 108   ;;  %s1905_s13 = smov (!%p273_p10), 91  }
  0x12   : > { %s1906_s14 = smov (!%p273_p10), 90   ;;  %s1907_s19 = smov (!%p273_p10), [#allocation4]  }
  0x14   : > { %v372_v0 = vlaneseq  ;;  %v1895_v1 = vmov 1983009808   ;;  %s2000_s11 = scalar_select %p329_p11, %s1885_s24, 1  ;;  %v1896_v5 = vmov 0.0   ;;  %v1897_v6 = vmov 0  }
  0x15   : > { %v370_v2 = vunpack.c.l.s4 %v1895_v1  ;;  %1690 = vmatprep.subr.bf16.mxu1 %v1896_v5  ;;  %453 = vmatprep.mubr.bf16.mxu0 %v1897_v6  ;;  %vm1898_vm0 = vmmov 0   ;;  %vm403_vm1 = vcmask 1039360   ;;  %vm411_vm2 = vcmask 1041408   ;;  %v1628_v22 = vld [vmem:[%s2210_s2 + $0x4] sm:$0xf] }
  0x16   : > { %v2002_v3 = vshrl.u32 %v372_v0, 7  ;;  %s1745_s12 = smul.u32 12, %s2000_s11  ;;  %1692 = vmatprep.mubr.msk.bf16.mxu1 %vm1898_vm0, %v1896_v5  ;;  %vm407_vm3 = vcmask 31744   ;;  %vm605_vm4 = vcmask 1031168   ;;  %v392_v33 = vld [vmem:[%s2210_s2] sm:$0xf] }
  0x17   : > { %v371_v4 = vunpack.c.0.s8 %v370_v2  ;;  %vm715_vm5 = vcmask 900096   ;;  %v1635_v43 = vld [vmem:[%s2210_s2 + $0x8] sm:$0xf]  ;;  %vm825_vm6 = vcmask 891904   ;;  %v1639_v53 = vld [vmem:[%s2210_s2 + $0xc] sm:$0xf] }
  0x18   : > { %s336_s15 = scalar_lea.vmem %s2208_s0, %s1745_s12  ;;  %s1669_s16 = sadd.s32 6, %s1745_s12  ;;  %vm935_vm7 = vcmask 883712   ;;  %v1643_v63 = vld [vmem:[%s2210_s2 + $0x10] sm:$0xf]  ;;  %vm1045_vm8 = vcmask 752640   ;;  %vm1155_vm9 = vcmask 744448  }
  0x19   : > { %v374_v7 = vsub.s32 %v371_v4, %v2002_v3  ;;  %v365_v8 = vld [vmem:[%s336_s15] sm:$0x3f]  ;;  %s347_s20 = scalar_lea.vmem %s2209_s1, %s1669_s16  ;;  %s1904_s12 = smov 92   ;;  %vm1265_vm10 = vcmask 736256   ;;  %vm1384_vm11 = vcmask 7168  }
  0x1a   : > { %v368_v10 = vcombine.high %v365_v8, %v365_v8  ;;  %v1627_v13 = vld.sshfl [vmem:[%s347_s20] sm:$0x3f pattern:$0x76325410]  ;;  %1385 = vst.msk [vmem:[#allocation2] sm:$0xff] %vm1384_vm11, %v1896_v5  ;;  %1386 = vst.msk [vmem:[#allocation3] sm:$0xff] %vm1384_vm11, %v1896_v5 }
  0x1b   : > { %v2013_v9 = vrot.slane %v365_v8, %v374_v7  ;;  %s1821_s20 = sshll.u32 %s1907_s19, 4  ;;  %s1822_s20 = int_to_ptr.vmem [resolvable:$false] %s1821_s20 }
  0x1c   : > { %v2016_v11 = vrot.slane %v368_v10, %v374_v7 }
  0x1d   : > { %395 = vrot.lane.b32.xlu0 %v2013_v9, %s1899_s17  ;;  %v383_v12 = vcombine.high %v2013_v9, %v2013_v9  ;;  %v506_v25 = vsel %vm411_vm2, %v2013_v9, 0 }
  0x1e   : > { %399 = vrot.lane.b32.xlu1 %v2016_v11, %s1899_s17  ;;  %v512_v27 = vsel %vm411_vm2, %v2016_v11, 0 }
  0x21   : > { %397 = vrot.lane.b32.xlu0 %v383_v12, %s1899_s17 }
  0x22   : > { %401 = vrot.lane.b32.xlu1 %v1627_v13, %s1899_s17 }
  0x25   : > { %597 = vrot.lane.b32.xlu0 %v2013_v9, %s1900_s27 }
  0x26   : > { %599 = vrot.lane.b32.xlu1 %v383_v12, %s1900_s27 }
  0x29   : > { %601 = vrot.lane.b32.xlu0 %v2016_v11, %s1900_s27 }
  0x2a   : > { %603 = vrot.lane.b32.xlu1 %v1627_v13, %s1900_s27  ;;  %s1823_s27 = scalar_lea.vmem %s1822_s20, 384 }
  0x2d   : > { %707 = vrot.lane.b32.xlu0 %v2013_v9, %s1901_s28 }
  0x2e   : > { %709 = vrot.lane.b32.xlu1 %v383_v12, %s1901_s28 }
  0x31   : > { %711 = vrot.lane.b32.xlu0 %v2016_v11, %s1901_s28 }
  0x32   : > { %713 = vrot.lane.b32.xlu1 %v1627_v13, %s1901_s28  ;;  %s313_s28 = sand.u32 1, %s1877_s22  }
  0x33   : > { %s1433_s17 = scalar_lea.sflag [#allocation5], %s313_s28 }
  0x35   : > { %817 = vrot.lane.b32.xlu0 %v2013_v9, %s1902_s30 }
  0x36   : > { %819 = vrot.lane.b32.xlu1 %v383_v12, %s1902_s30 }
  0x39   : > { %821 = vrot.lane.b32.xlu0 %v2016_v11, %s1902_s30 }
  0x3a   : > { %823 = vrot.lane.b32.xlu1 %v1627_v13, %s1902_s30  ;;  %s1744_s30 = smul.u32 12, %s313_s28 }
  0x3d   : > { %927 = vrot.lane.b32.xlu0 %v2013_v9, %s1903_s8 }
  0x3e   : > { %929 = vrot.lane.b32.xlu1 %v383_v12, %s1903_s8 }
  0x41   : > { %931 = vrot.lane.b32.xlu0 %v2016_v11, %s1903_s8 }
  0x42   : > { %933 = vrot.lane.b32.xlu1 %v1627_v13, %s1903_s8  ;;  %s315_s8 = scalar_lea.vmem [#allocation4], %s1744_s30 }
  0x45   : > { %1037 = vrot.lane.b32.xlu0 %v2013_v9, %s1904_s12 }
  0x46   : > { %1039 = vrot.lane.b32.xlu1 %v383_v12, %s1904_s12 }
  0x49   : > { %1041 = vrot.lane.b32.xlu0 %v2016_v11, %s1904_s12 }
  0x4a   : > { %1043 = vrot.lane.b32.xlu1 %v1627_v13, %s1904_s12  ;;  %s1747_s12 = smul.u32 192, %s1885_s24 }
  0x4c   : > { %s1455_s16 = scalar_lea.hbm %s2212_s4, %s1747_s12 }
  0x4d   : > { %1147 = vrot.lane.b32.xlu0 %v2013_v9, %s1905_s13 }
  0x4e   : > { %1149 = vrot.lane.b32.xlu1 %v383_v12, %s1905_s13 }
  0x51   : > { %1151 = vrot.lane.b32.xlu0 %v2016_v11, %s1905_s13 }
  0x52   : > { %1153 = vrot.lane.b32.xlu1 %v1627_v13, %s1905_s13  ;;  %s1457_s13 = sshll.u32 %s315_s8, 4  ;;  %s1458_s13 = int_to_ptr.vmem [resolvable:$true] %s1457_s13 }
  0x53   : > { %s1817_s18 = scalar_lea.vmem %s1458_s13, 192  ;;  %p1824_p1 = scmp.lt.s32.totalorder %s1458_s13, %s1822_s20 }
  0x54   : > { %p1818_p12 = scmp.ne.s32.totalorder %s1458_s13, %s1817_s18  ;;  %p1825_p2 = scmp.lt.s32.totalorder %s1823_s27, %s1817_s18 }
  0x55   : > { %1257 = vrot.lane.b32.xlu0 %v2013_v9, %s1906_s14 }
  0x56   : > { %1259 = vrot.lane.b32.xlu1 %v383_v12, %s1906_s14  ;;  %p1819_p13 = pnand %p1818_p12, %p1983_p4  ;;  %p1826_p3 = por %p1825_p2, %p1824_p1 }
  0x58   : > { %p1820_p0 = pneg %p1819_p13 }
  0x59   : > { %1261 = vrot.lane.b32.xlu0 %v2016_v11, %s1906_s14 }
  0x5a   : > { %1263 = vrot.lane.b32.xlu1 %v1627_v13, %s1906_s14  ;;  %p1827_p5 = pnand %p1826_p3, %p1820_p0 }
  0x8f   : > { %v396_v14 = vpop.permute.xlu0 %395 }
  0x90   : > { %v400_v15 = vpop.permute.xlu1 %399 }
  0x93   : > { %v398_v16 = vpop.permute.xlu0 %397 }
  0x94   : > { %v405_v17 = vsel %vm403_vm1, %v398_v16, %v400_v15  ;;  %v404_v18 = vsel %vm403_vm1, %v396_v14, %v398_v16  ;;  %v402_v19 = vpop.permute.xlu1 %401 }
  0x95   : > { %1629 = vmatprep.subr.msk.bf16.mxu0 %vm411_vm2, %v405_v17  ;;  %v413_v20 = vsel %vm411_vm2, %v404_v18, 0  ;;  %v406_v21 = vsel %vm403_vm1, %v400_v15, %v402_v19 }
  0x96   : > { %436 = vmatpush1.bf16.msra.mxu0 %v413_v20  ;;  %v419_v23 = vsel %vm411_vm2, %v406_v21, 0 }
  0x97   : > { %1632 = vmatprep.subr.msk.bf16.mxu0 %vm411_vm2, %v383_v12  ;;  %v598_v24 = vpop.permute.xlu0 %597  ;;  %1691 = vmatpush3.bf16.msra.mxu1 %v419_v23  ;;  %v1647_v12 = vld [vmem:[%s2210_s2 + $0x14] sm:$0xf] }
  0x98   : > { %v600_v26 = vpop.permute.xlu1 %599  ;;  %1696 = vmatprep.subr.bf16.mxu1 %v1896_v5 }
  0x99   : > { %1630 = vmatmul.mubr.msk.bf16.vlgmr.msra.gmra.mxu0 %vm407_vm3, %v1628_v22  ;;  %v606_v29 = vsel %vm605_vm4, %v598_v24, %v600_v26 }
  0x9a   : > { %529 = vmatpush1.bf16.msra.mxu0 %v506_v25  ;;  %546 = vmatprep.mubr.bf16.mxu0 %v1897_v6  ;;  %v613_v34 = vsel %vm411_vm2, %v606_v29, 0 }
  0x9b   : > { %1693 = vmatmul.mubr.msk.bf16.vlgmr.msra.gmra.mxu1 %vm407_vm3, %v1628_v22  ;;  %v602_v28 = vpop.permute.xlu0 %601  ;;  %v1651_v22 = vld [vmem:[%s2210_s2 + $0x18] sm:$0xf] }
  0x9c   : > { %v607_v30 = vsel %vm605_vm4, %v600_v26, %v602_v28  ;;  %1697 = vmatpush3.bf16.msra.mxu1 %v512_v27  ;;  %1698 = vmatprep.mubr.msk.bf16.mxu1 %vm1898_vm0, %v1896_v5  ;;  %v604_v31 = vpop.permute.xlu1 %603 }
  0x9d   : > { %1636 = vmatprep.subr.msk.bf16.mxu0 %vm411_vm2, %v607_v30  ;;  %1702 = vmatprep.subr.bf16.mxu1 %v1896_v5  ;;  %v608_v32 = vsel %vm605_vm4, %v602_v28, %v604_v31 }
  0x9e   : > { %v619_v36 = vsel %vm411_vm2, %v608_v32, 0  ;;  %v1655_v32 = vld [vmem:[%s2210_s2 + $0x1c] sm:$0xf] }
  0x9f   : > { %v708_v35 = vpop.permute.xlu0 %707 }
  0xa0   : > { %v710_v37 = vpop.permute.xlu1 %709 }
  0xa1   : > { %1633 = vmatmul.mubr.msk.bf16.vlgmr.msra.gmra.mxu0 %vm407_vm3, %v392_v33  ;;  %v716_v39 = vsel %vm715_vm5, %v708_v35, %v710_v37  ;;  %v1659_v35 = vld [vmem:[%s2210_s2 + $0x20] sm:$0xf] }
  0xa2   : > { %636 = vmatpush1.bf16.msra.mxu0 %v613_v34  ;;  %653 = vmatprep.mubr.bf16.mxu0 %v1897_v6  ;;  %v723_v44 = vsel %vm411_vm2, %v716_v39, 0 }
  0xa3   : > { %1699 = vmatmul.mubr.msk.bf16.vlgmr.msra.gmra.mxu1 %vm407_vm3, %v392_v33  ;;  %v712_v38 = vpop.permute.xlu0 %711 }
  0xa4   : > { %1703 = vmatpush3.bf16.msra.mxu1 %v619_v36  ;;  %v717_v40 = vsel %vm715_vm5, %v710_v37, %v712_v38  ;;  %1704 = vmatprep.mubr.msk.bf16.mxu1 %vm1898_vm0, %v1896_v5  ;;  %v714_v41 = vpop.permute.xlu1 %713 }
  0xa5   : > { %1640 = vmatprep.subr.msk.bf16.mxu0 %vm411_vm2, %v717_v40  ;;  %1708 = vmatprep.subr.bf16.mxu1 %v1896_v5  ;;  %v718_v42 = vsel %vm715_vm5, %v712_v38, %v714_v41 }
  0xa6   : > { %v729_v46 = vsel %vm411_vm2, %v718_v42, 0 }
  0xa7   : > { %v818_v45 = vpop.permute.xlu0 %817 }
  0xa8   : > { %v820_v47 = vpop.permute.xlu1 %819 }
  0xa9   : > { %1637 = vmatmul.mubr.msk.bf16.vlgmr.msra.gmra.mxu0 %vm407_vm3, %v1635_v43  ;;  %v826_v49 = vsel %vm825_vm6, %v818_v45, %v820_v47 }
  0xaa   : > { %746 = vmatpush1.bf16.msra.mxu0 %v723_v44  ;;  %763 = vmatprep.mubr.bf16.mxu0 %v1897_v6  ;;  %v833_v54 = vsel %vm411_vm2, %v826_v49, 0 }
  0xab   : > { %1705 = vmatmul.mubr.msk.bf16.vlgmr.msra.gmra.mxu1 %vm407_vm3, %v1635_v43  ;;  %v822_v48 = vpop.permute.xlu0 %821 }
  0xac   : > { %1709 = vmatpush3.bf16.msra.mxu1 %v729_v46  ;;  %v827_v50 = vsel %vm825_vm6, %v820_v47, %v822_v48  ;;  %1710 = vmatprep.mubr.msk.bf16.mxu1 %vm1898_vm0, %v1896_v5  ;;  %v824_v51 = vpop.permute.xlu1 %823 }
  0xad   : > { %1644 = vmatprep.subr.msk.bf16.mxu0 %vm411_vm2, %v827_v50  ;;  %1714 = vmatprep.subr.bf16.mxu1 %v1896_v5  ;;  %v828_v52 = vsel %vm825_vm6, %v822_v48, %v824_v51 }
  0xae   : > { %v839_v56 = vsel %vm411_vm2, %v828_v52, 0 }
  0xaf   : > { %v928_v55 = vpop.permute.xlu0 %927 }
  0xb0   : > { %v930_v57 = vpop.permute.xlu1 %929 }
  0xb1   : > { %1641 = vmatmul.mubr.msk.bf16.vlgmr.msra.gmra.mxu0 %vm407_vm3, %v1639_v53  ;;  %v936_v59 = vsel %vm935_vm7, %v928_v55, %v930_v57 }
  0xb2   : > { %856 = vmatpush1.bf16.msra.mxu0 %v833_v54  ;;  %873 = vmatprep.mubr.bf16.mxu0 %v1897_v6  ;;  %v943_v0 = vsel %vm411_vm2, %v936_v59, 0 }
  0xb3   : > { %1711 = vmatmul.mubr.msk.bf16.vlgmr.msra.gmra.mxu1 %vm407_vm3, %v1639_v53  ;;  %v932_v58 = vpop.permute.xlu0 %931 }
  0xb4   : > { %1715 = vmatpush3.bf16.msra.mxu1 %v839_v56  ;;  %v937_v60 = vsel %vm935_vm7, %v930_v57, %v932_v58  ;;  %1716 = vmatprep.mubr.msk.bf16.mxu1 %vm1898_vm0, %v1896_v5  ;;  %v934_v61 = vpop.permute.xlu1 %933 }
  0xb5   : > { %1648 = vmatprep.subr.msk.bf16.mxu0 %vm411_vm2, %v937_v60  ;;  %1720 = vmatprep.subr.bf16.mxu1 %v1896_v5  ;;  %v938_v62 = vsel %vm935_vm7, %v932_v58, %v934_v61 }
  0xb6   : > { %v949_v2 = vsel %vm411_vm2, %v938_v62, 0 }
  0xb7   : > { %v1038_v1 = vpop.permute.xlu0 %1037 }
  0xb8   : > { %v1040_v4 = vpop.permute.xlu1 %1039 }
  0xb9   : > { %1645 = vmatmul.mubr.msk.bf16.vlgmr.msra.gmra.mxu0 %vm407_vm3, %v1643_v63  ;;  %v1046_v8 = vsel %vm1045_vm8, %v1038_v1, %v1040_v4 }
  0xba   : > { %966 = vmatpush1.bf16.msra.mxu0 %v943_v0  ;;  %983 = vmatprep.mubr.bf16.mxu0 %v1897_v6  ;;  %v1053_v13 = vsel %vm411_vm2, %v1046_v8, 0 }
  0xbb   : > { %1717 = vmatmul.mubr.msk.bf16.vlgmr.msra.gmra.mxu1 %vm407_vm3, %v1643_v63  ;;  %v1042_v7 = vpop.permute.xlu0 %1041 }
  0xbc   : > { %1721 = vmatpush3.bf16.msra.mxu1 %v949_v2  ;;  %v1047_v9 = vsel %vm1045_vm8, %v1040_v4, %v1042_v7  ;;  %1722 = vmatprep.mubr.msk.bf16.mxu1 %vm1898_vm0, %v1896_v5  ;;  %v1044_v10 = vpop.permute.xlu1 %1043 }
  0xbd   : > { %1652 = vmatprep.subr.msk.bf16.mxu0 %vm411_vm2, %v1047_v9  ;;  %1726 = vmatprep.subr.bf16.mxu1 %v1896_v5  ;;  %v1048_v11 = vsel %vm1045_vm8, %v1042_v7, %v1044_v10 }
  0xbe   : > { %v1059_v15 = vsel %vm411_vm2, %v1048_v11, 0 }
  0xbf   : > { %v1148_v14 = vpop.permute.xlu0 %1147 }
  0xc0   : > { %v1150_v16 = vpop.permute.xlu1 %1149 }
  0xc1   : > { %1649 = vmatmul.mubr.msk.bf16.vlgmr.msra.gmra.mxu0 %vm407_vm3, %v1647_v12  ;;  %v1156_v18 = vsel %vm1155_vm9, %v1148_v14, %v1150_v16 }
  0xc2   : > { %1076 = vmatpush1.bf16.msra.mxu0 %v1053_v13  ;;  %1093 = vmatprep.mubr.bf16.mxu0 %v1897_v6  ;;  %v1163_v23 = vsel %vm411_vm2, %v1156_v18, 0 }
  0xc3   : > { %1723 = vmatmul.mubr.msk.bf16.vlgmr.msra.gmra.mxu1 %vm407_vm3, %v1647_v12  ;;  %v1152_v17 = vpop.permute.xlu0 %1151 }
  0xc4   : > { %1727 = vmatpush3.bf16.msra.mxu1 %v1059_v15  ;;  %v1157_v19 = vsel %vm1155_vm9, %v1150_v16, %v1152_v17  ;;  %1728 = vmatprep.mubr.msk.bf16.mxu1 %vm1898_vm0, %v1896_v5  ;;  %v1154_v20 = vpop.permute.xlu1 %1153 }
  0xc5   : > { %1656 = vmatprep.subr.msk.bf16.mxu0 %vm411_vm2, %v1157_v19  ;;  %1732 = vmatprep.subr.bf16.mxu1 %v1896_v5  ;;  %v1158_v21 = vsel %vm1155_vm9, %v1152_v17, %v1154_v20 }
  0xc6   : > { %v1169_v25 = vsel %vm411_vm2, %v1158_v21, 0 }
  0xc7   : > { %v1258_v24 = vpop.permute.xlu0 %1257 }
  0xc8   : > { %v1260_v26 = vpop.permute.xlu1 %1259 }
  0xc9   : > { %1653 = vmatmul.mubr.msk.bf16.vlgmr.msra.gmra.mxu0 %vm407_vm3, %v1651_v22  ;;  %v1266_v28 = vsel %vm1265_vm10, %v1258_v24, %v1260_v26 }
  0xca   : > { %1186 = vmatpush1.bf16.msra.mxu0 %v1163_v23  ;;  %1203 = vmatprep.mubr.bf16.mxu0 %v1897_v6  ;;  %v1273_v33 = vsel %vm411_vm2, %v1266_v28, 0 }
  0xcb   : > { %1729 = vmatmul.mubr.msk.bf16.vlgmr.msra.gmra.mxu1 %vm407_vm3, %v1651_v22  ;;  %v1262_v27 = vpop.permute.xlu0 %1261 }
  0xcc   : > { %1733 = vmatpush3.bf16.msra.mxu1 %v1169_v25  ;;  %v1267_v29 = vsel %vm1265_vm10, %v1260_v26, %v1262_v27  ;;  %1734 = vmatprep.mubr.msk.bf16.mxu1 %vm1898_vm0, %v1896_v5  ;;  %v1264_v30 = vpop.permute.xlu1 %1263 }
  0xcd   : > { %1660 = vmatprep.subr.msk.bf16.mxu0 %vm411_vm2, %v1267_v29  ;;  %1738 = vmatprep.subr.bf16.mxu1 %v1896_v5  ;;  %v1268_v31 = vsel %vm1265_vm10, %v1262_v27, %v1264_v30 }
  0xce   : > { %v1279_v34 = vsel %vm411_vm2, %v1268_v31, 0 }
  0xd1   : > { %1657 = vmatmul.mubr.msk.bf16.vlgmr.msra.gmra.mxu0 %vm407_vm3, %v1655_v32 }
  0xd2   : > { %1296 = vmatpush1.bf16.msra.mxu0 %v1273_v33  ;;  %1313 = vmatprep.mubr.bf16.mxu0 %v1897_v6 }
  0xd3   : > { %1735 = vmatmul.mubr.msk.bf16.vlgmr.msra.gmra.mxu1 %vm407_vm3, %v1655_v32 }
  0xd4   : > { %1739 = vmatpush3.bf16.msra.mxu1 %v1279_v34  ;;  %1740 = vmatprep.mubr.msk.bf16.mxu1 %vm1898_vm0, %v1896_v5 }
  0xd9   : > { %1661 = vmatmul.mubr.msk.bf16.vlgmr.msra.gmra.mxu0 %vm407_vm3, %v1659_v35 }
  0xdb   : > { %1741 = vmatmul.mubr.msk.bf16.vlgmr.msra.gmra.mxu1 %vm407_vm3, %v1659_v35 }
 0x159   : > { %v455_v6 = vpop.f32.mrf.mxu0 }
 0x15b   : > { %v457_v36 = vpop.f32.mrf.mxu0  ;;  %v496_v37 = vpop.f32.mrf.mxu1 }
 0x15d   : > { %v459_v38 = vpop.f32.mrf.mxu0  ;;  %v1694_v39 = vpop.f32.mrf.mxu1 }
 0x15f   : > { %v460_v40 = vpop.f32.mrf.mxu0  ;;  %v499_v41 = vpop.f32.mrf.mxu1 }
 0x161   : > { %v1695_v42 = vpop.f32.mrf.mxu1  ;;  %v548_v43 = vpop.f32.mrf.mxu0 }
 0x162   : > { %v549_v24 = vadd.f32 %v548_v43, %v455_v6 }
 0x163   : > { %v550_v44 = vpop.f32.mrf.mxu0  ;;  %v589_v45 = vpop.f32.mrf.mxu1 }
 0x164   : > { %v551_v27 = vadd.f32 %v550_v44, %v457_v36  ;;  %v590_v28 = vadd.f32 %v589_v45, %v496_v37  ;;  %v1391_v36 = vsub.s32 0, %v2002_v3  ;;  %v1387_v45 = vld [vmem:[%s2211_s3] sm:$0x7] }
 0x165   : > { %v552_v46 = vpop.f32.mrf.mxu0  ;;  %v1700_v47 = vpop.f32.mrf.mxu1 }
 0x167   : > { %v553_v48 = vpop.f32.mrf.mxu0  ;;  %v592_v49 = vpop.f32.mrf.mxu1 }
 0x169   : > { %v1701_v50 = vpop.f32.mrf.mxu1  ;;  %v655_v51 = vpop.f32.mrf.mxu0 }
 0x16a   : > { %v702_v29 = vadd.f32 %v655_v51, %v549_v24  ;;  %v1395_v51 = vsub.s32 1, %v2002_v3 }
 0x16b   : > { %v657_v52 = vpop.f32.mrf.mxu0  ;;  %v696_v53 = vpop.f32.mrf.mxu1 }
 0x16c   : > { %v703_v32 = vadd.f32 %v657_v52, %v551_v27  ;;  %v704_v33 = vadd.f32 %v696_v53, %v590_v28 }
 0x16d   : > { %v659_v5 = vpop.f32.mrf.mxu0  ;;  %v1706_v54 = vpop.f32.mrf.mxu1 }
 0x16e   : > { %v1399_v5 = vsub.s32 2, %v2002_v3 }
 0x16f   : > { %v660_v55 = vpop.f32.mrf.mxu0  ;;  %v699_v56 = vpop.f32.mrf.mxu1 }
 0x171   : > { %v1707_v57 = vpop.f32.mrf.mxu1  ;;  %v765_v58 = vpop.f32.mrf.mxu0 }
 0x172   : > { %v812_v34 = vadd.f32 %v765_v58, %v702_v29  ;;  %v1392_v57 = vrot.slane %v1387_v45, %v1391_v36 }
 0x173   : > { %v767_v59 = vpop.f32.mrf.mxu0  ;;  %v806_v60 = vpop.f32.mrf.mxu1 }
 0x174   : > { %v813_v39 = vadd.f32 %v767_v59, %v703_v32  ;;  %v814_v40 = vadd.f32 %v806_v60, %v704_v33 }
 0x175   : > { %v769_v61 = vpop.f32.mrf.mxu0  ;;  %v1712_v62 = vpop.f32.mrf.mxu1 }
 0x177   : > { %v770_v63 = vpop.f32.mrf.mxu0  ;;  %v809_v0 = vpop.f32.mrf.mxu1 }
 0x178   : > { %v1396_v63 = vrot.slane %v1387_v45, %v1395_v51 }
 0x179   : > { %v1713_v1 = vpop.f32.mrf.mxu1  ;;  %v875_v2 = vpop.f32.mrf.mxu0 }
 0x17a   : > { %v922_v41 = vadd.f32 %v875_v2, %v812_v34  ;;  %v1400_v2 = vrot.slane %v1387_v45, %v1399_v5 }
 0x17b   : > { %v877_v4 = vpop.f32.mrf.mxu0  ;;  %v916_v7 = vpop.f32.mrf.mxu1 }
 0x17c   : > { %v923_v47 = vadd.f32 %v877_v4, %v813_v39  ;;  %v924_v6 = vadd.f32 %v916_v7, %v814_v40 }
 0x17d   : > { %v879_v8 = vpop.f32.mrf.mxu0  ;;  %v1718_v9 = vpop.f32.mrf.mxu1 }
 0x17f   : > { %v880_v10 = vpop.f32.mrf.mxu0  ;;  %v919_v11 = vpop.f32.mrf.mxu1 }
 0x181   : > { %v1719_v12 = vpop.f32.mrf.mxu1  ;;  %v985_v13 = vpop.f32.mrf.mxu0 }
 0x182   : > { %v1032_v43 = vadd.f32 %v985_v13, %v922_v41 }
 0x183   : > { %v987_v14 = vpop.f32.mrf.mxu0  ;;  %v1026_v15 = vpop.f32.mrf.mxu1 }
 0x184   : > { %v1033_v48 = vadd.f32 %v987_v14, %v923_v47  ;;  %v1034_v49 = vadd.f32 %v1026_v15, %v924_v6 }
 0x185   : > { %v989_v16 = vpop.f32.mrf.mxu0  ;;  %v1724_v17 = vpop.f32.mrf.mxu1 }
 0x187   : > { %v990_v18 = vpop.f32.mrf.mxu0  ;;  %v1029_v19 = vpop.f32.mrf.mxu1 }
 0x189   : > { %v1725_v20 = vpop.f32.mrf.mxu1  ;;  %v1095_v21 = vpop.f32.mrf.mxu0 }
 0x18a   : > { %v1142_v50 = vadd.f32 %v1095_v21, %v1032_v43 }
 0x18b   : > { %v1097_v22 = vpop.f32.mrf.mxu0  ;;  %v1136_v23 = vpop.f32.mrf.mxu1 }
 0x18c   : > { %v1143_v54 = vadd.f32 %v1097_v22, %v1033_v48  ;;  %v1144_v55 = vadd.f32 %v1136_v23, %v1034_v49 }
 0x18d   : > { %v1099_v25 = vpop.f32.mrf.mxu0  ;;  %v1730_v26 = vpop.f32.mrf.mxu1 }
 0x18f   : > { %v1100_v30 = vpop.f32.mrf.mxu0  ;;  %v1139_v31 = vpop.f32.mrf.mxu1 }
 0x191   : > { %v1731_v35 = vpop.f32.mrf.mxu1  ;;  %v1205_v38 = vpop.f32.mrf.mxu0 }
 0x192   : > { %v1252_v56 = vadd.f32 %v1205_v38, %v1142_v50 }
 0x193   : > { %v1207_v42 = vpop.f32.mrf.mxu0  ;;  %v1246_v46 = vpop.f32.mrf.mxu1 }
 0x194   : > { %v1253_v60 = vadd.f32 %v1207_v42, %v1143_v54  ;;  %v1254_v61 = vadd.f32 %v1246_v46, %v1144_v55 }
 0x195   : > { %v1209_v37 = vpop.f32.mrf.mxu0  ;;  %v1736_v44 = vpop.f32.mrf.mxu1 }
 0x197   : > { %v1210_v52 = vpop.f32.mrf.mxu0  ;;  %v1249_v53 = vpop.f32.mrf.mxu1 }
 0x199   : > { %v1737_v58 = vpop.f32.mrf.mxu1  ;;  %v1315_v59 = vpop.f32.mrf.mxu0 }
 0x19a   : > { %v1362_v62 = vadd.f32 %v1315_v59, %v1252_v56 }
 0x19b   : > { %v1317_v0 = vpop.f32.mrf.mxu0  ;;  %v1356_v1 = vpop.f32.mrf.mxu1 }
 0x19c   : > { %v1404_v4 = vmul.f32 %v1392_v57, %v1362_v62  ;;  %v1363_v7 = vadd.f32 %v1317_v0, %v1253_v60  ;;  %v1364_v8 = vadd.f32 %v1356_v1, %v1254_v61 }
 0x19d   : > { %v1319_v9 = vpop.f32.mrf.mxu0  ;;  %v1742_v3 = vpop.f32.mrf.mxu1 }
 0x19e   : > { %v1670_v10 = vpack.c.bf16 %v1363_v7, %v1362_v62  ;;  %v1405_v11 = vmul.f32 %v1396_v63, %v1363_v7  ;;  %v1671_v12 = vpack.c.bf16 %v1364_v8, %v1364_v8  ;;  %v1406_v15 = vmul.f32 %v1400_v2, %v1364_v8 }
 0x19f   : > { %v1320_v13 = vpop.f32.mrf.mxu0  ;;  %v1359_v14 = vpop.f32.mrf.mxu1  ;;  %v1416_v16 = vmul.f32 %v1404_v4, %v1362_v62 }
 0x1a0   : > { %v1417_v17 = vmul.f32 %v1405_v11, %v1363_v7  ;;  %v1408_v18 = vadd.f32 %v1405_v11, %v1404_v4  ;;  %1378 = vst [vmem:[%s315_s8] sm:$0xff] %v1670_v10  ;;  %1379 = vst [vmem:[%s315_s8 + $0x8] sm:$0xf] %v1671_v12  ;;  %v1418_v21 = vmul.f32 %v1406_v15, %v1364_v8 }
 0x1a1   : > { %v1743_v19 = vpop.f32.mrf.mxu1 }
 0x1a2   : > { %v1409_v20 = vadd.f32 %v1408_v18, %v1406_v15  ;;  %v1419_v22 = vadd.f32 %v1417_v17, %v1416_v16 }
 0x1a4   : > { %1410 = vadd.xlane.f32.xlu0 %v1409_v20  ;;  %v1420_v23 = vadd.f32 %v1419_v22, %v1418_v21 }
 0x1a6   : > { %1421 = vadd.xlane.f32.xlu1 %v1420_v23 }
 0x1a7   : > { %1830 = shalt.err (!%p1827_p5)
}
 0x1a8   : > { %s1831_s24 = scalar_lea.hbm %s1455_s16, 192  ;;  %s1835_s8 = scalar_lea.hbm %s2212_s4, 384 }
 0x1a9   : > { %p1832_p6 = scmp.ne.s32.totalorder %s1455_s16, %s1831_s24  ;;  %p1836_p10 = scmp.lt.s32.totalorder %s1455_s16, %s2212_s4 }
 0x1aa   : > { %p1837_p11 = scmp.lt.s32.totalorder %s1835_s8, %s1831_s24 }
 0x1ab   : > { %p1833_p7 = pnand %p1832_p6, %p1983_p4 }
 0x1ac   : > { %p1838_p12 = por %p1837_p11, %p1836_p10 }
 0x1ad   : > { %p1834_p9 = pneg %p1833_p7 }
 0x1af   : > { %p1839_p13 = pnand %p1838_p12, %p1834_p9 }
 0x1b1   : > { %1842 = shalt.err (!%p1839_p13)
}
 0x1b2   : > { %1748 = dma.vmem_to_hbm [thread:$0]  (%p1983_p4), %s1458_s13, 192, %s1455_s16, %s1433_s17   ;;  %v1407_v24 = vld [vmem:[#allocation2] sm:$0xff]  ;;  %v1415_v26 = vld [vmem:[#allocation3] sm:$0xff] }
 0x1b3   : > { %s1625_s15 = sshll.u32 %s2000_s11, 3 }
 0x1b4   : > { %s359_s20 = scalar_lea.vmem %s2213_s5, %s1625_s15  ;;  %s363_s7 = scalar_lea.vmem %s2214_s6, %s1625_s15 }
 0x22d   : > { %v1411_v25 = vpop.xlane.xlu0 %1410 }
 0x22e   : > { %v1412_v27 = vadd.f32 %v1411_v25, %v1407_v24 }
 0x22f   : > { %v1422_v28 = vpop.xlane.xlu1 %1421 }
 0x230   : > { %1414 = vst.msk [vmem:[#allocation2] sm:$0xff] %vm1384_vm11, %v1412_v27  ;;  %v1423_v29 = vadd.f32 %v1422_v28, %v1415_v26 }
 0x232   : > { %1424 = vst.msk [vmem:[#allocation3] sm:$0xff] %vm1384_vm11, %v1423_v29 }
 0x237   : > { %v1428_v30 = vld [vmem:[#allocation2] sm:$0xff] }
 0x238   : > { %1429 = vst.msk [vmem:[%s359_s20] sm:$0xff] %vm1384_vm11, %v1428_v30 }
 0x239   : > { %v1430_v31 = vld [vmem:[#allocation3] sm:$0xff] }
 0x23a   : > { %1431 = vst.msk [vmem:[%s363_s7] sm:$0xff] %vm1384_vm11, %v1430_v31 }
 0x23b PF: > { %p1755_p4 = scmp.ge.s32.totalorder %s1893_s26, 2  ;;  %s1475_s11 = sand.u32 1, %s1873_s21  }
 0x23c   : > { %s1476_s13 = scalar_lea.sflag [#allocation5], %s1475_s11 }
 0x23d   : > { %p1751_p0 = pnand %p1755_p4, %p1990_p8 }
 0x23f   : > { %p1752_p1 = pneg %p1751_p0 }
 0x241   : > { %1868 = dma.done.wait (%p1752_p1), %s1476_s13, 192  }
 0x242   : > { %1870 = vsyncadd (%p1752_p1), %s1476_s13, 4294967104  ;;  %s20_s26 = sadd.s32 1, %s1893_s26   ;;  %s2217_s21 = smov %s1877_s22 }
 0x243   : > { %p17_p2 = scmp.ge.s32.totalorder %s20_s26, 4   ;;  %s2218_s22 = smov %s1881_s23 }
 0x244   : > { %s2219_s23 = smov %s1996_s10  ;;  %s2220_s24 = smov %s1889_s25 }
 0x245   : > { %s2221_s25 = smov %s2223_s29  ;;  %19 = sbr.rel (!%p17_p2) target bundleno = 4 (0x4), region = 117 }
 0x24a   :  { %1495 = vsyncpa [#allocation5], 1 }
 0x24b   :  { %1497 = vsyncpa [#allocation5 + $0x1], 1 }

</bundles_post_ra>
